<compile_context>
chip_gen: v6e
topology: v6e:2x2x1
jax: 0.10.0
libtpu: 0.0.40
codegen_flags: <defaults>
</compile_context>

<pallas_src>
import functools
import math

import jax
import jax.numpy as jnp
from jax.experimental import pallas as pl
from jax.experimental.pallas import tpu as pltpu


def _rmsnorm_kernel(x_ref, w_ref, o_ref, *, eps):
    # Upcast to float32 for the variance computation (matches torch .to(float32)).
    x = x_ref[...].astype(jnp.float32)
    variance = jnp.mean(x * x, axis=-1, keepdims=True)
    inv = jax.lax.rsqrt(variance + eps)
    # Cast back to the activation dtype BEFORE the weight multiply (matches
    # torch: `self.weight * hidden_states.to(input_dtype)`); the weight was
    # pre-cast to the promoted output dtype in the wrapper, so the multiply
    # promotes exactly as in PyTorch and no in-kernel weight cast is needed.
    y = (x * inv).astype(x_ref.dtype)
    o_ref[...] = (w_ref[...] * y).astype(o_ref.dtype)


# Sublane packing per element size: one vreg holds 8 f32 / 16 bf16 / 32 int8 rows.
_SUBLANE_PACK = {4: 8, 2: 16, 1: 32}


def _choose_row_tile(rows, hidden, in_dtype, out_dtype):
    """Pick the row-tile size and an explicit VMEM limit for the pallas_call."""
    in_isz = jnp.dtype(in_dtype).itemsize
    out_isz = jnp.dtype(out_dtype).itemsize
    sub = max(_SUBLANE_PACK.get(in_isz, 8), _SUBLANE_PACK.get(out_isz, 8), 8)

    # Per-row VMEM footprint of one grid step: double-buffered input block,
    # double-buffered output block, plus one f32 intermediate of the block.
    per_row = hidden * (2 * in_isz + 2 * out_isz + 4)
    budget = 40 * 1024 * 1024  # leaves headroom under v7x's 64 MiB physical VMEM

    tm = max(sub, min(1024, budget // max(per_row, 1)))
    tm = (tm // sub) * sub

    if rows <= tm:
        if rows > 2 * sub:
            # Split into >= 2 grid steps so v7x's two TensorCores both get work.
            half = -(-rows // 2)             # ceil(rows / 2)
            tm = -(-half // sub) * sub       # round up to a sublane multiple
        else:
            tm = rows                        # single full-extent block (always legal)

    vmem_est = tm * per_row + 2 * hidden * out_isz
    vmem_limit = int(min(max(vmem_est + 8 * 1024 * 1024, 24 * 1024 * 1024),
                         48 * 1024 * 1024))
    return tm, vmem_limit


def llama_rms_norm(hidden_states: jax.Array, weight: jax.Array, eps: float = 1e-6):
    """RMSNorm over the last axis. hidden_states: [..., hidden], weight: [hidden]."""
    orig_shape = hidden_states.shape
    hidden = orig_shape[-1]
    rows = math.prod(orig_shape[:-1]) if len(orig_shape) > 1 else 1

    in_dtype = hidden_states.dtype
    # Matches torch promotion of `self.weight * hidden_states.to(input_dtype)`.
    out_dtype = jnp.promote_types(weight.dtype, in_dtype)

    x2d = hidden_states.reshape(rows, hidden)
    w2d = weight.reshape(1, hidden).astype(out_dtype)

    tm, vmem_limit = _choose_row_tile(rows, hidden, in_dtype, out_dtype)
    grid = (pl.cdiv(rows, tm),)  # ragged last block (if any) is masked by Pallas

    kernel = functools.partial(_rmsnorm_kernel, eps=eps)

    in_isz = jnp.dtype(in_dtype).itemsize
    out_isz = jnp.dtype(out_dtype).itemsize
    cost = pl.CostEstimate(
        flops=4 * rows * hidden,
        transcendentals=rows,
        bytes_accessed=rows * hidden * (in_isz + out_isz) + hidden * out_isz,
    )

    out = pl.pallas_call(
        kernel,
        out_shape=jax.ShapeDtypeStruct((rows, hidden), out_dtype),
        grid_spec=pltpu.PrefetchScalarGridSpec(
            num_scalar_prefetch=0,
            grid=grid,
            in_specs=[
                pl.BlockSpec((tm, hidden), lambda i: (i, 0)),
                pl.BlockSpec((1, hidden), lambda i: (0, 0)),
            ],
            out_specs=pl.BlockSpec((tm, hidden), lambda i: (i, 0)),
        ),
        compiler_params=pltpu.CompilerParams(
            dimension_semantics=("parallel",),
            vmem_limit_bytes=vmem_limit,
        ),
        cost_estimate=cost,
    )(x2d, w2d)

    return out.reshape(orig_shape)


if __name__ == "__main__":
    key = jax.random.PRNGKey(0)
    batch, seq, hidden = 2, 8, 128
    eps = 1e-6

    x = jax.random.normal(key, (batch, seq, hidden), dtype=jnp.float32)
    # nn.Parameter(torch.ones(hidden_size)) -> deterministic ones
    weight = jnp.ones((hidden,), dtype=jnp.float32)

    out = llama_rms_norm(x, weight, eps=eps)
    out = jax.block_until_ready(out)

    # Reference check in plain JAX (same math as the PyTorch module).
    xf = x.astype(jnp.float32)
    var = jnp.mean(xf * xf, axis=-1, keepdims=True)
    ref = weight * (xf * jax.lax.rsqrt(var + eps)).astype(x.dtype)
    assert out.shape == ref.shape and out.dtype == ref.dtype
    assert jnp.allclose(out, ref, atol=1e-5, rtol=1e-5), "mismatch vs reference"

    print("KERNEL_OK")
</pallas_src>

<mosaic_0001>
module attributes {stable_mosaic.version = 11 : i64} {
  func.func @_rmsnorm_kernel(%arg0: i32, %arg1: memref<16x128xf32, #tpu.memory_space<vmem>>, %arg2: memref<1x128xf32, #tpu.memory_space<vmem>>, %arg3: memref<16x128xf32, #tpu.memory_space<vmem>>) attributes {dimension_semantics = [#tpu.dimension_semantics<parallel>], iteration_bounds = array<i64: 1>, scalar_prefetch = 0 : i64, scratch_operands = 0 : i64, tpu.core_type = #tpu.core_type<tc>, window_params = [{transform_indices = @transform_0, window_bounds = array<i64: 16, 128>}, {pipeline_mode = #tpu.pipeline_mode<synchronous>, transform_indices = @transform_1, window_bounds = array<i64: 1, 128>}, {transform_indices = @transform_2, window_bounds = array<i64: 16, 128>}]} {
    %c0 = arith.constant 0 : index
    %c0_0 = arith.constant 0 : index
    %0 = vector.load %arg1[%c0, %c0_0] : memref<16x128xf32, #tpu.memory_space<vmem>>, vector<16x128xf32>
    %1 = arith.mulf %0, %0 : vector<16x128xf32>
    %cst = arith.constant dense<0.000000e+00> : vector<16xf32>
    %2 = vector.multi_reduction <add>, %1, %cst [1] : vector<16x128xf32> to vector<16xf32>
    %3 = vector.shape_cast %2 : vector<16xf32> to vector<16x1xf32>
    %cst_1 = arith.constant 1.280000e+02 : f32
    %4 = vector.broadcast %cst_1 : f32 to vector<16x1xf32>
    %5 = arith.divf %3, %4 : vector<16x1xf32>
    %cst_2 = arith.constant 9.99999997E-7 : f32
    %6 = vector.broadcast %cst_2 : f32 to vector<16x1xf32>
    %7 = arith.addf %5, %6 : vector<16x1xf32>
    %8 = math.rsqrt %7 : vector<16x1xf32>
    %9 = vector.broadcast %8 : vector<16x1xf32> to vector<16x128xf32>
    %10 = arith.mulf %0, %9 : vector<16x128xf32>
    %c0_3 = arith.constant 0 : index
    %c0_4 = arith.constant 0 : index
    %11 = vector.load %arg2[%c0_3, %c0_4] : memref<1x128xf32, #tpu.memory_space<vmem>>, vector<1x128xf32>
    %12 = vector.broadcast %11 : vector<1x128xf32> to vector<16x128xf32>
    %13 = arith.mulf %12, %10 : vector<16x128xf32>
    %c0_5 = arith.constant 0 : index
    %c0_6 = arith.constant 0 : index
    %14 = vector.load %arg3[%c0_5, %c0_6] : memref<16x128xf32, #tpu.memory_space<vmem>>, vector<16x128xf32>
    tpu.vector_store %arg3[%c0_5, %c0_6], %13 {strides = array<i32>} : memref<16x128xf32, #tpu.memory_space<vmem>>, vector<16x128xf32>,
    return
  }
  func.func @transform_0(%arg0: i32) -> (i32, i32) {
    %c0_i32 = arith.constant 0 : i32
    %c0_i32_0 = arith.constant 0 : i32
    return %arg0, %c0_i32 : i32, i32
  }
  func.func @transform_1(%arg0: i32) -> (i32, i32) {
    %c0_i32 = arith.constant 0 : i32
    %c0_i32_0 = arith.constant 0 : i32
    %c0_i32_1 = arith.constant 0 : i32
    return %c0_i32, %c0_i32_0 : i32, i32
  }
  func.func @transform_2(%arg0: i32) -> (i32, i32) {
    %c0_i32 = arith.constant 0 : i32
    %c0_i32_0 = arith.constant 0 : i32
    return %arg0, %c0_i32 : i32, i32
  }
}

</mosaic_0001>

<bundles_post_ra>
// kernel: tpu_custom_call.1
= control target key start
LH: loop header
LB: loop body
LE: loop exit
PB: predicated region body
PF: predicated region fallthrough
CT: control target
= control target key end

     0   :  { %7 = vsyncpa [#allocation3], 0  ;;  %s158_s0 = inlined_call_operand.hbm [shape: f32[16,128], index: 0, kind: input, shape index: {}]   ;;  %s159_s1 = inlined_call_operand.vmem [shape: f32[1,128], index: 1, kind: input, shape index: {}]   ;;  %s160_s2 = inlined_call_operand.hbm [shape: f32[16,128], index: 2, kind: output, shape index: {}]  }
   0x1   :  { %8 = vsyncpa [#allocation4], 0  ;;  %s124_s9 = smov [#allocation2]  }
   0x2   :  { %s14_s10 = sshll.u32 %s124_s9, 4  ;;  %s15_s10 = int_to_ptr.vmem [resolvable:$true] %s14_s10 }
   0x3   :  { %s88_s11 = scalar_lea.vmem %s15_s10, 256  ;;  %p93_p1 = scmp.lt.s32.totalorder %s15_s10, %s15_s10 }
   0x4   :  { %p89_p0 = scmp.ne.s32.totalorder %s15_s10, %s88_s11  ;;  %p94_p2 = scmp.lt.s32.totalorder %s88_s11, %s88_s11 }
   0x6   :  { %p95_p3 = por %p94_p2, %p93_p1 }
   0x8   :  { %p96_p4 = pnand %p95_p3, %p89_p0 }
   0xa   :  { %99 = shalt.err (!%p96_p4)
}
   0xb   :  { %s125_s12 = smov 128   ;;  %s126_s13 = smov 8  }
   0xc   :  { %20 = dma.hbm_to_vmem [thread:$0]  %s158_s0, 256, %s15_s10, [#allocation3], %s125_s12, %s125_s12, %s126_s13  }
   0xd   :  { %120 = dma.done.wait [#allocation3], 256  }
   0xe   :  { %121 = vsyncadd [#allocation3], 4294967040  ;;  %v26_v0 = vld [vmem:[#allocation2] sm:$0xff]  ;;  %v27_v1 = vld [vmem:[#allocation2 + $0x8] sm:$0xff]  ;;  %s127_s0 = smov [#allocation5]  }
   0xf   :  { %v28_v2 = vmul.f32 %v26_v0, %v26_v0  ;;  %v29_v3 = vmul.f32 %v27_v1, %v27_v1  ;;  %v71_v11 = vld [vmem:[%s159_s1] ss:$0 sm:$0xff]  ;;  %s59_s18 = sshll.u32 %s127_s0, 4  ;;  %s60_s18 = int_to_ptr.vmem [resolvable:$true] %s59_s18 }
  0x10   :  { %s100_s19 = scalar_lea.vmem %s60_s18, 256  ;;  %p105_p6 = scmp.lt.s32.totalorder %s60_s18, %s60_s18 }
  0x11   :  { %30 = vadd.xlane.f32.xlu0 %v28_v2  ;;  %p101_p5 = scmp.ne.s32.totalorder %s60_s18, %s100_s19  ;;  %p106_p7 = scmp.lt.s32.totalorder %s100_s19, %s100_s19 }
  0x13   :  { %p107_p8 = por %p106_p7, %p105_p6 }
  0x15   :  { %32 = vadd.xlane.f32.xlu0 %v29_v3  ;;  %p108_p9 = pnand %p107_p8, %p101_p5 }
  0x9a   :  { %v31_v4 = vpop.xlane.xlu0 %30 }
  0x9b   :  { %v35_v5 = vmul.f32 0.0078125, %v31_v4 }
  0x9d   :  { %v37_v6 = vadd.f32 1e-06, %v35_v5 }
  0x9e   :  { %v33_v7 = vpop.xlane.xlu0 %32 }
  0x9f   :  { %76 = vrsqrt.f32 %v37_v6  ;;  %v36_v8 = vmul.f32 0.0078125, %v33_v7 }
  0xa1   :  { %v38_v9 = vadd.f32 1e-06, %v36_v8 }
  0xa3   :  { %78 = vrsqrt.f32 %v38_v9 }
  0xac   :  { %v77_v10 = vpop.eup %76 }
  0xad   :  { %v41_v12 = vmul.f32 %v77_v10, %v26_v0 }
  0xaf   :  { %v50_v13 = vmul.f32 %v71_v11, %v41_v12 }
  0xb0   :  { %v79_v14 = vpop.eup %78 }
  0xb1   :  { %v42_v15 = vmul.f32 %v79_v14, %v27_v1  ;;  %52 = vst [vmem:[#allocation5] sm:$0xff] %v50_v13 }
  0xb3   :  { %v51_v16 = vmul.f32 %v71_v11, %v42_v15 }
  0xb5   :  { %53 = vst [vmem:[#allocation5 + $0x8] sm:$0xff] %v51_v16 }
  0xb6   :  { %111 = shalt.err (!%p108_p9)
}
  0xb7   :  { %65 = dma.vmem_to_hbm [thread:$0]  %s60_s18, 256, %s160_s2, [#allocation4], %s125_s12, %s125_s12, %s126_s13  }
  0xb8   :  { %122 = dma.done.wait [#allocation4], 256  }
  0xb9   :  { %123 = vsyncadd [#allocation4], 4294967040 }
  0xba   :  { %69 = vsyncpa [#allocation3], 1 }
  0xbb   :  { %70 = vsyncpa [#allocation4], 1 }

</bundles_post_ra>
